<compile_context>
chip_gen: v7x
topology: tpu7x:2x2x1
jax: 0.10.0
libtpu: 0.0.40
codegen_flags: <defaults>
</compile_context>

<pallas_src>
import numpy as np
import jax
import jax.numpy as jnp
from jax import lax
from jax.experimental import pallas as pl
from jax.experimental.pallas import tpu as pltpu


def _make_head_kernel(Cin, H, W, num_classes):
    HW = H * W
    C5 = 5 * Cin

    def kernel(x_ref, mask_ref, w1_ref, shift_ref, w2_ref, b2_ref,
               cls_ref, reg_ref):
        # x_ref:     (1, Cin, H*W)    flattened NCHW input, lane-dense
        # mask_ref:  (5, H*W)         per-dx column-validity mask (0/1)
        # w1_ref:    (Ctot, 25*Cin)   fused 5x5 conv weights (cls ++ reg),
        #                             BN scale already folded in
        # shift_ref: (Ctot, 1)        folded BatchNorm shift (inference)
        # w2_ref:    (Cout, Ctot)     block-diagonal fused 1x1 conv weights
        # b2_ref:    (Cout, 1)
        # cls_ref:   (1, num_classes, H*W), reg_ref: (1, 2, H*W)  NCHW outputs
        x = x_ref[0]                                      # (Cin, HW)

        # ---- stage 1: horizontal (dx) taps --------------------------------
        # shift columns by dx-2 lanes; column wrap across the W boundary is
        # killed by the per-dx mask (center tap dx=2 never wraps).
        dx_taps = []
        for dx in range(5):
            s = dx - 2
            if s > 0:
                t = jnp.concatenate(
                    [x[:, s:], jnp.zeros((Cin, s), jnp.float32)], axis=1)
            elif s < 0:
                t = jnp.concatenate(
                    [jnp.zeros((Cin, -s), jnp.float32), x[:, :HW + s]], axis=1)
            else:
                t = x
            if dx != 2:
                t = t * mask_ref[dx:dx + 1, :]
            dx_taps.append(t)
        row_band = jnp.concatenate(dx_taps, axis=0)       # (5*Cin, HW)

        # ---- stage 2: vertical (dy) taps ----------------------------------
        # shift the whole band by (dy-2)*W lanes; the shift is a multiple of W
        # so rows outside [0, H) are exactly the zero-filled region -> SAME
        # padding with no padded HBM copy.
        dy_taps = []
        for dy in range(5):
            s = (dy - 2) * W
            if s > 0:
                t = jnp.concatenate(
                    [row_band[:, s:], jnp.zeros((C5, s), jnp.float32)], axis=1)
            elif s < 0:
                t = jnp.concatenate(
                    [jnp.zeros((C5, -s), jnp.float32), row_band[:, :HW + s]],
                    axis=1)
            else:
                t = row_band
            dy_taps.append(t)
        patches = jnp.concatenate(dy_taps, axis=0)        # (25*Cin, HW)

        # 5x5 conv for BOTH branches as one MXU matmul (K = 25*Cin), BN scale
        # pre-folded into w1; add the folded BN shift and ReLU.
        h = jnp.dot(w1_ref[...], patches, preferred_element_type=jnp.float32)
        h = jnp.maximum(h + shift_ref[...], 0.0)
        # fused 1x1 convs: block-diagonal (Cout, Ctot) @ (Ctot, HW) + bias
        y = jnp.dot(w2_ref[...], h, preferred_element_type=jnp.float32)
        y = y + b2_ref[...]

        cls_ref[...] = jax.nn.sigmoid(
            y[:num_classes, :]).reshape(1, num_classes, HW)
        reg_ref[...] = y[num_classes:num_classes + 2, :].reshape(1, 2, HW)

    return kernel


def head_forward(x_nchw, params):
    """Head.forward: returns (hm, offset) in NCHW, like the PyTorch module."""
    N, Cin, H, W = x_nchw.shape
    HW = H * W
    channel = params["cls_scale"].shape[0]
    num_classes = params["cls_w2"].shape[1]
    Ctot = 2 * channel
    Cout = num_classes + 2

    # ---- fuse cls + reg parameters (one-time, tiny) -------------------------
    # HWIO (5,5,Cin,ch) ++ (5,5,Cin,ch) -> (Ctot, 25*Cin) matrix whose K index
    # is (dy*5 + dx)*Cin + cin, matching the kernel's tap ordering
    # (dy-major, then dx, then cin).  Folded BN scale is baked into w1.
    w1_all = jnp.concatenate([params["cls_w1"], params["reg_w1"]], axis=-1)
    w1_mat = jnp.transpose(w1_all, (3, 0, 1, 2)).reshape(Ctot, 25 * Cin)
    scale = jnp.concatenate(
        [params["cls_scale"], params["reg_scale"]]).reshape(Ctot, 1)
    shift = jnp.concatenate(
        [params["cls_shift"], params["reg_shift"]]).reshape(Ctot, 1)
    w1_mat = w1_mat * scale                               # fold BN scale
    # 1x1 convs as one block-diagonal (Cout, Ctot) matrix.
    w2_cls = jnp.concatenate(
        [params["cls_w2"].T, jnp.zeros((num_classes, channel), jnp.float32)],
        axis=1)
    w2_reg = jnp.concatenate(
        [jnp.zeros((2, channel), jnp.float32), params["reg_w2"].T], axis=1)
    w2_all = jnp.concatenate([w2_cls, w2_reg], axis=0)
    b2_all = jnp.concatenate(
        [params["cls_b2"], params["reg_b2"]]).reshape(Cout, 1)

    # Per-dx column-validity masks (compile-time constants, 5 x H*W floats).
    cols = np.arange(HW) % W
    masks = np.stack(
        [((cols + dx - 2 >= 0) & (cols + dx - 2 < W)) for dx in range(5)]
    ).astype(np.float32)
    masks = jnp.asarray(masks)

    # NCHW -> (N, Cin, H*W) is a free (contiguous) reshape: lane-dense input,
    # no transpose, no jnp.pad round-trip through HBM.
    xf = x_nchw.reshape(N, Cin, HW).astype(jnp.float32)

    kernel = _make_head_kernel(Cin, H, W, num_classes)
    cls_out, reg_out = pl.pallas_call(
        kernel,
        out_shape=(
            jax.ShapeDtypeStruct((N, num_classes, HW), jnp.float32),
            jax.ShapeDtypeStruct((N, 2, HW), jnp.float32),
        ),
        grid=(N,),
        in_specs=[
            pl.BlockSpec((1, Cin, HW), lambda n: (n, 0, 0)),
            pl.BlockSpec((5, HW), lambda n: (0, 0)),
            pl.BlockSpec((Ctot, 25 * Cin), lambda n: (0, 0)),
            pl.BlockSpec((Ctot, 1), lambda n: (0, 0)),
            pl.BlockSpec((Cout, Ctot), lambda n: (0, 0)),
            pl.BlockSpec((Cout, 1), lambda n: (0, 0)),
        ],
        out_specs=(
            pl.BlockSpec((1, num_classes, HW), lambda n: (n, 0, 0)),
            pl.BlockSpec((1, 2, HW), lambda n: (n, 0, 0)),
        ),
        compiler_params=pltpu.CompilerParams(
            dimension_semantics=("parallel",)),
    )(xf, masks, w1_mat, shift, w2_all, b2_all)

    # (N, C, H*W) -> (N, C, H, W): free reshape, already NCHW.
    return (cls_out.reshape(N, num_classes, H, W),
            reg_out.reshape(N, 2, H, W))


def _ref_branch(x_nchw, w1, scale, shift, w2, b2, apply_sigmoid):
    """Pure-JAX reference for validation (NCHW end to end)."""
    y = lax.conv_general_dilated(
        x_nchw, w1, window_strides=(1, 1), padding="SAME",
        dimension_numbers=("NCHW", "HWIO", "NCHW"),
        precision=lax.Precision.HIGHEST)
    y = jnp.maximum(
        y * scale[None, :, None, None] + shift[None, :, None, None], 0.0)
    y = jnp.einsum("nchw,co->nohw", y, w2, precision=lax.Precision.HIGHEST)
    y = y + b2[None, :, None, None]
    if apply_sigmoid:
        y = jax.nn.sigmoid(y)
    return y


def init_params(key, in_channels, channel=64, num_classes=1, eps=1e-5):
    keys = jax.random.split(key, 14)

    def conv5(k, cin, cout):
        # PyTorch weight is (cout, cin, 5, 5); we keep HWIO = (5, 5, cin, cout)
        return 0.1 * jax.random.normal(k, (5, 5, cin, cout), jnp.float32)

    def bn_fold(kg, kb, km, kv, c):
        gamma = 1.0 + 0.1 * jax.random.normal(kg, (c,), jnp.float32)
        beta = 0.1 * jax.random.normal(kb, (c,), jnp.float32)
        mean = 0.1 * jax.random.normal(km, (c,), jnp.float32)
        var = jnp.abs(jax.random.normal(kv, (c,), jnp.float32)) + 0.5
        scale = gamma / jnp.sqrt(var + eps)
        shift = beta - mean * scale
        return scale, shift

    cls_scale, cls_shift = bn_fold(keys[1], keys[2], keys[3], keys[4], channel)
    reg_scale, reg_shift = bn_fold(keys[8], keys[9], keys[10], keys[11], channel)
    return {
        "cls_w1": conv5(keys[0], in_channels, channel),
        "cls_scale": cls_scale, "cls_shift": cls_shift,
        "cls_w2": 0.1 * jax.random.normal(keys[5], (channel, num_classes), jnp.float32),
        "cls_b2": 0.1 * jax.random.normal(keys[6], (num_classes,), jnp.float32),
        "reg_w1": conv5(keys[7], in_channels, channel),
        "reg_scale": reg_scale, "reg_shift": reg_shift,
        "reg_w2": 0.1 * jax.random.normal(keys[12], (channel, 2), jnp.float32),
        "reg_b2": 0.1 * jax.random.normal(keys[13], (2,), jnp.float32),
    }


if __name__ == "__main__":
    # TODO(synk): BatchNorm is implemented in inference mode (running stats
    # folded into scale/shift); PyTorch training-mode batch statistics are not
    # reproduced.
    N, C, H, W = 2, 4, 16, 16
    key = jax.random.PRNGKey(0)
    kx, kp = jax.random.split(key)
    x = jax.random.normal(kx, (N, C, H, W), jnp.float32)   # NCHW like PyTorch
    params = init_params(kp, in_channels=C, channel=64, num_classes=1)

    fwd = jax.jit(head_forward)
    hm, offset = jax.block_until_ready(fwd(x, params))

    # validate against pure-JAX reference
    hm_ref = _ref_branch(x, params["cls_w1"], params["cls_scale"],
                         params["cls_shift"], params["cls_w2"],
                         params["cls_b2"], True)
    off_ref = _ref_branch(x, params["reg_w1"], params["reg_scale"],
                          params["reg_shift"], params["reg_w2"],
                          params["reg_b2"], False)
    assert hm.shape == (N, 1, H, W) and offset.shape == (N, 2, H, W)
    assert jnp.allclose(hm, hm_ref, atol=5e-4), \
        float(jnp.max(jnp.abs(hm - hm_ref)))
    assert jnp.allclose(offset, off_ref, atol=5e-4), \
        float(jnp.max(jnp.abs(offset - off_ref)))
    print("KERNEL_OK")
</pallas_src>

<mosaic_0001>
module attributes {stable_mosaic.version = 11 : i64} {
  func.func @kernel(%arg0: i32, %arg1: memref<1x4x256xf32, #tpu.memory_space<vmem>>, %arg2: memref<5x256xf32, #tpu.memory_space<vmem>>, %arg3: memref<128x100xf32, #tpu.memory_space<vmem>>, %arg4: memref<128x1xf32, #tpu.memory_space<vmem>>, %arg5: memref<3x128xf32, #tpu.memory_space<vmem>>, %arg6: memref<3x1xf32, #tpu.memory_space<vmem>>, %arg7: memref<1x1x256xf32, #tpu.memory_space<vmem>>, %arg8: memref<1x2x256xf32, #tpu.memory_space<vmem>>) attributes {dimension_semantics = [#tpu.dimension_semantics<parallel>], iteration_bounds = array<i64: 2>, scalar_prefetch = 0 : i64, scratch_operands = 0 : i64, tpu.core_type = #tpu.core_type<tc>, window_params = [{transform_indices = @transform_0, window_bounds = array<i64: 1, 4, 256>}, {pipeline_mode = #tpu.pipeline_mode<synchronous>, transform_indices = @transform_1, window_bounds = array<i64: 5, 256>}, {pipeline_mode = #tpu.pipeline_mode<synchronous>, transform_indices = @transform_2, window_bounds = array<i64: 128, 100>}, {pipeline_mode = #tpu.pipeline_mode<synchronous>, transform_indices = @transform_3, window_bounds = array<i64: 128, 1>}, {pipeline_mode = #tpu.pipeline_mode<synchronous>, transform_indices = @transform_4, window_bounds = array<i64: 3, 128>}, {pipeline_mode = #tpu.pipeline_mode<synchronous>, transform_indices = @transform_5, window_bounds = array<i64: 3, 1>}, {transform_indices = @transform_6, window_bounds = array<i64: 1, 1, 256>}, {transform_indices = @transform_7, window_bounds = array<i64: 1, 2, 256>}]} {
    %c0 = arith.constant 0 : index
    %c0_0 = arith.constant 0 : index
    %c0_1 = arith.constant 0 : index
    %0 = vector.load %arg1[%c0, %c0_0, %c0_1] : memref<1x4x256xf32, #tpu.memory_space<vmem>>, vector<1x4x256xf32>
    %1 = vector.shape_cast %0 : vector<1x4x256xf32> to vector<4x256xf32>
    %cst = arith.constant 0.000000e+00 : f32
    %2 = vector.broadcast %cst : f32 to vector<4x2xf32>
    %3 = vector.extract_strided_slice %1 {offsets = [0, 0], sizes = [4, 254], strides = [1, 1]} : vector<4x256xf32> to vector<4x254xf32>
    %4 = tpu.concatenate %2, %3 in 1 : vector<4x2xf32>, vector<4x254xf32> -> vector<4x256xf32>
    %c0_2 = arith.constant 0 : index
    %c0_3 = arith.constant 0 : index
    %5 = vector.load %arg2[%c0_2, %c0_3] : memref<5x256xf32, #tpu.memory_space<vmem>>, vector<1x256xf32>
    %6 = vector.broadcast %5 : vector<1x256xf32> to vector<4x256xf32>
    %7 = arith.mulf %4, %6 : vector<4x256xf32>
    %cst_4 = arith.constant 0.000000e+00 : f32
    %8 = vector.broadcast %cst_4 : f32 to vector<4x1xf32>
    %9 = vector.extract_strided_slice %1 {offsets = [0, 0], sizes = [4, 255], strides = [1, 1]} : vector<4x256xf32> to vector<4x255xf32>
    %10 = tpu.concatenate %8, %9 in 1 : vector<4x1xf32>, vector<4x255xf32> -> vector<4x256xf32>
    %c1 = arith.constant 1 : index
    %c0_5 = arith.constant 0 : index
    %11 = vector.load %arg2[%c1, %c0_5] : memref<5x256xf32, #tpu.memory_space<vmem>>, vector<1x256xf32>
    %12 = vector.broadcast %11 : vector<1x256xf32> to vector<4x256xf32>
    %13 = arith.mulf %10, %12 : vector<4x256xf32>
    %14 = vector.extract_strided_slice %1 {offsets = [0, 1], sizes = [4, 255], strides = [1, 1]} : vector<4x256xf32> to vector<4x255xf32>
    %cst_6 = arith.constant 0.000000e+00 : f32
    %15 = vector.broadcast %cst_6 : f32 to vector<4x1xf32>
    %16 = tpu.concatenate %14, %15 in 1 : vector<4x255xf32>, vector<4x1xf32> -> vector<4x256xf32>
    %c3 = arith.constant 3 : index
    %c0_7 = arith.constant 0 : index
    %17 = vector.load %arg2[%c3, %c0_7] : memref<5x256xf32, #tpu.memory_space<vmem>>, vector<1x256xf32>
    %18 = vector.broadcast %17 : vector<1x256xf32> to vector<4x256xf32>
    %19 = arith.mulf %16, %18 : vector<4x256xf32>
    %20 = vector.extract_strided_slice %1 {offsets = [0, 2], sizes = [4, 254], strides = [1, 1]} : vector<4x256xf32> to vector<4x254xf32>
    %cst_8 = arith.constant 0.000000e+00 : f32
    %21 = vector.broadcast %cst_8 : f32 to vector<4x2xf32>
    %22 = tpu.concatenate %20, %21 in 1 : vector<4x254xf32>, vector<4x2xf32> -> vector<4x256xf32>
    %c4 = arith.constant 4 : index
    %c0_9 = arith.constant 0 : index
    %23 = vector.load %arg2[%c4, %c0_9] : memref<5x256xf32, #tpu.memory_space<vmem>>, vector<1x256xf32>
    %24 = vector.broadcast %23 : vector<1x256xf32> to vector<4x256xf32>
    %25 = arith.mulf %22, %24 : vector<4x256xf32>
    %26 = tpu.concatenate %7, %13, %1, %19, %25 in 0 : vector<4x256xf32>, vector<4x256xf32>, vector<4x256xf32>, vector<4x256xf32>, vector<4x256xf32> -> vector<20x256xf32>
    %cst_10 = arith.constant 0.000000e+00 : f32
    %27 = vector.broadcast %cst_10 : f32 to vector<20x32xf32>
    %28 = vector.extract_strided_slice %26 {offsets = [0, 0], sizes = [20, 224], strides = [1, 1]} : vector<20x256xf32> to vector<20x224xf32>
    %29 = tpu.concatenate %27, %28 in 1 : vector<20x32xf32>, vector<20x224xf32> -> vector<20x256xf32>
    %cst_11 = arith.constant 0.000000e+00 : f32
    %30 = vector.broadcast %cst_11 : f32 to vector<20x16xf32>
    %31 = vector.extract_strided_slice %26 {offsets = [0, 0], sizes = [20, 240], strides = [1, 1]} : vector<20x256xf32> to vector<20x240xf32>
    %32 = tpu.concatenate %30, %31 in 1 : vector<20x16xf32>, vector<20x240xf32> -> vector<20x256xf32>
    %33 = vector.extract_strided_slice %26 {offsets = [0, 16], sizes = [20, 240], strides = [1, 1]} : vector<20x256xf32> to vector<20x240xf32>
    %cst_12 = arith.constant 0.000000e+00 : f32
    %34 = vector.broadcast %cst_12 : f32 to vector<20x16xf32>
    %35 = tpu.concatenate %33, %34 in 1 : vector<20x240xf32>, vector<20x16xf32> -> vector<20x256xf32>
    %36 = vector.extract_strided_slice %26 {offsets = [0, 32], sizes = [20, 224], strides = [1, 1]} : vector<20x256xf32> to vector<20x224xf32>
    %cst_13 = arith.constant 0.000000e+00 : f32
    %37 = vector.broadcast %cst_13 : f32 to vector<20x32xf32>
    %38 = tpu.concatenate %36, %37 in 1 : vector<20x224xf32>, vector<20x32xf32> -> vector<20x256xf32>
    %39 = tpu.concatenate %29, %32, %26, %35, %38 in 0 : vector<20x256xf32>, vector<20x256xf32>, vector<20x256xf32>, vector<20x256xf32>, vector<20x256xf32> -> vector<100x256xf32>
    %c0_14 = arith.constant 0 : index
    %c0_15 = arith.constant 0 : index
    %40 = vector.load %arg3[%c0_14, %c0_15] : memref<128x100xf32, #tpu.memory_space<vmem>>, vector<128x100xf32>
    %cst_16 = arith.constant dense<0.000000e+00> : vector<128x256xf32>
    %41 = tpu.matmul %40, %39, %cst_16 {dimension_numbers = #tpu.dot_dimension_numbers<[1], [0], [0], [1], [0, 0, 1, 1], [], []>} : vector<128x100xf32>, vector<100x256xf32>, vector<128x256xf32> -> vector<128x256xf32>
    %c0_17 = arith.constant 0 : index
    %c0_18 = arith.constant 0 : index
    %42 = vector.load %arg4[%c0_17, %c0_18] : memref<128x1xf32, #tpu.memory_space<vmem>>, vector<128x1xf32>
    %43 = vector.broadcast %42 : vector<128x1xf32> to vector<128x256xf32>
    %44 = arith.addf %41, %43 : vector<128x256xf32>
    %cst_19 = arith.constant 0.000000e+00 : f32
    %45 = vector.broadcast %cst_19 : f32 to vector<128x256xf32>
    %46 = arith.maximumf %44, %45 : vector<128x256xf32>
    %c0_20 = arith.constant 0 : index
    %c0_21 = arith.constant 0 : index
    %47 = vector.load %arg5[%c0_20, %c0_21] : memref<3x128xf32, #tpu.memory_space<vmem>>, vector<3x128xf32>
    %cst_22 = arith.constant dense<0.000000e+00> : vector<3x256xf32>
    %48 = tpu.matmul %47, %46, %cst_22 {dimension_numbers = #tpu.dot_dimension_numbers<[1], [0], [0], [1], [0, 0, 1, 1], [], []>} : vector<3x128xf32>, vector<128x256xf32>, vector<3x256xf32> -> vector<3x256xf32>
    %c0_23 = arith.constant 0 : index
    %c0_24 = arith.constant 0 : index
    %49 = vector.load %arg6[%c0_23, %c0_24] : memref<3x1xf32, #tpu.memory_space<vmem>>, vector<3x1xf32>
    %50 = vector.broadcast %49 : vector<3x1xf32> to vector<3x256xf32>
    %51 = arith.addf %48, %50 : vector<3x256xf32>
    %52 = vector.extract_strided_slice %51 {offsets = [0, 0], sizes = [1, 256], strides = [1, 1]} : vector<3x256xf32> to vector<1x256xf32>
    %53 = arith.negf %52 : vector<1x256xf32>
    %54 = math.exp %53 : vector<1x256xf32>
    %cst_25 = arith.constant 1.000000e+00 : f32
    %55 = vector.broadcast %cst_25 : f32 to vector<1x256xf32>
    %56 = arith.addf %55, %54 : vector<1x256xf32>
    %57 = arith.divf %55, %56 : vector<1x256xf32>
    %58 = vector.shape_cast %57 : vector<1x256xf32> to vector<1x1x256xf32>
    %c0_26 = arith.constant 0 : index
    %c0_27 = arith.constant 0 : index
    %c0_28 = arith.constant 0 : index
    %59 = vector.load %arg7[%c0_26, %c0_27, %c0_28] : memref<1x1x256xf32, #tpu.memory_space<vmem>>, vector<1x1x256xf32>
    tpu.vector_store %arg7[%c0_26, %c0_27, %c0_28], %58 {strides = array<i32>} : memref<1x1x256xf32, #tpu.memory_space<vmem>>, vector<1x1x256xf32>,
    %60 = vector.extract_strided_slice %51 {offsets = [1, 0], sizes = [2, 256], strides = [1, 1]} : vector<3x256xf32> to vector<2x256xf32>
    %61 = vector.shape_cast %60 : vector<2x256xf32> to vector<1x2x256xf32>
    %c0_29 = arith.constant 0 : index
    %c0_30 = arith.constant 0 : index
    %c0_31 = arith.constant 0 : index
    %62 = vector.load %arg8[%c0_29, %c0_30, %c0_31] : memref<1x2x256xf32, #tpu.memory_space<vmem>>, vector<1x2x256xf32>
    tpu.vector_store %arg8[%c0_29, %c0_30, %c0_31], %61 {strides = array<i32>} : memref<1x2x256xf32, #tpu.memory_space<vmem>>, vector<1x2x256xf32>,
    return
  }
  func.func @transform_0(%arg0: i32) -> (i32, i32, i32) {
    %c0_i32 = arith.constant 0 : i32
    %c0_i32_0 = arith.constant 0 : i32
    %c0_i32_1 = arith.constant 0 : i32
    return %arg0, %c0_i32, %c0_i32_0 : i32, i32, i32
  }
  func.func @transform_1(%arg0: i32) -> (i32, i32) {
    %c0_i32 = arith.constant 0 : i32
    %c0_i32_0 = arith.constant 0 : i32
    %c0_i32_1 = arith.constant 0 : i32
    return %c0_i32, %c0_i32_0 : i32, i32
  }
  func.func @transform_2(%arg0: i32) -> (i32, i32) {
    %c0_i32 = arith.constant 0 : i32
    %c0_i32_0 = arith.constant 0 : i32
    %c0_i32_1 = arith.constant 0 : i32
    return %c0_i32, %c0_i32_0 : i32, i32
  }
  func.func @transform_3(%arg0: i32) -> (i32, i32) {
    %c0_i32 = arith.constant 0 : i32
    %c0_i32_0 = arith.constant 0 : i32
    %c0_i32_1 = arith.constant 0 : i32
    return %c0_i32, %c0_i32_0 : i32, i32
  }
  func.func @transform_4(%arg0: i32) -> (i32, i32) {
    %c0_i32 = arith.constant 0 : i32
    %c0_i32_0 = arith.constant 0 : i32
    %c0_i32_1 = arith.constant 0 : i32
    return %c0_i32, %c0_i32_0 : i32, i32
  }
  func.func @transform_5(%arg0: i32) -> (i32, i32) {
    %c0_i32 = arith.constant 0 : i32
    %c0_i32_0 = arith.constant 0 : i32
    %c0_i32_1 = arith.constant 0 : i32
    return %c0_i32, %c0_i32_0 : i32, i32
  }
  func.func @transform_6(%arg0: i32) -> (i32, i32, i32) {
    %c0_i32 = arith.constant 0 : i32
    %c0_i32_0 = arith.constant 0 : i32
    %c0_i32_1 = arith.constant 0 : i32
    return %arg0, %c0_i32, %c0_i32_0 : i32, i32, i32
  }
  func.func @transform_7(%arg0: i32) -> (i32, i32, i32) {
    %c0_i32 = arith.constant 0 : i32
    %c0_i32_0 = arith.constant 0 : i32
    %c0_i32_1 = arith.constant 0 : i32
    return %arg0, %c0_i32, %c0_i32_0 : i32, i32, i32
  }
}

</mosaic_0001>

<bundles_post_ra>
// kernel: head_forward.1
= control target key start
LH: loop header
LB: loop body
LE: loop exit
PB: predicated region body
PF: predicated region fallthrough
CT: control target
= control target key end

     0   :  { %s1377_s24 = smov 0   ;;  %s1643_s0 = inlined_call_operand.vmem [shape: f32[2,4,256], index: 0, kind: input, shape index: {}]   ;;  %s1644_s1 = inlined_call_operand.vmem [shape: f32[5,256], index: 1, kind: input, shape index: {}]   ;;  %s1645_s2 = inlined_call_operand.vmem [shape: f32[128,100], index: 2, kind: input, shape index: {}]   ;;  %s1646_s3 = inlined_call_operand.vmem [shape: f32[128,1], index: 3, kind: input, shape index: {}]   ;;  %s1647_s4 = inlined_call_operand.vmem [shape: f32[3,128], index: 4, kind: input, shape index: {}]   ;;  %s1648_s5 = inlined_call_operand.vmem [shape: f32[3,1], index: 5, kind: input, shape index: {}]   ;;  %s1649_s6 = inlined_call_operand.vmem [shape: f32[2,1,256], index: 6, kind: output, shape index: {0}]   ;;  %s1650_s7 = inlined_call_operand.vmem [shape: f32[2,2,256], index: 7, kind: output, shape index: {1}]  }
   0x1 LB: > { %s1129_s25 = sadd.s32 4294967295, %s1323_s24   ;;  %p1133_p0 = scmp.ge.s32.totalorder %s1323_s24, 1  ;;  %s1323_s24 = sphi %s1377_s24, %s18_s24  }
   0x2   : > { %p240_p1 = scmp.lt.s32.totalorder %s1323_s24, 3 }
   0x4   : > { %p241_p2 = pnand %p1133_p0, %p240_p1 }
   0x5   : > { %p276_p3 = scmp.lt.s32.totalorder (!%p241_p2), %s1129_s25, 1  ;;  %s1325_s30 = smov (!%p241_p2), 127   ;;  %v304_v2 = vlaneseq (!%p241_p2)  ;;  %v1139_v5 = vld [vmem:[%s1644_s1 + $0x1] ss:$8 sm:$0x3] (!%p241_p2)  ;;  %vm320_vm0 = vcmask (!%p241_p2), 7168  }
   0x6   : > { %244 = sbr.rel (%p241_p2) target bundleno = 828 (0x33c), region = 44  ;;  %s1326_s8 = smov (!%p241_p2), 1   ;;  %v1140_v7 = vld [vmem:[%s1644_s1 + $0x3] ss:$8 sm:$0x3] (!%p241_p2)  ;;  %vm344_vm1 = vcmask (!%p241_p2), 1039360  }
   0x7   : > { %s1327_s9 = smov (!%p241_p2), 2   ;;  %s1328_s10 = smov (!%p241_p2), 126   ;;  %v1392_v3 = vshrl.u32 (!%p241_p2), %v304_v2, 7  ;;  %v302_v11 = vld [vmem:[%s1644_s1] ss:$8 sm:$0x3] (!%p241_p2) }
   0x8   : > { %vm297_vm2 = vcmask (!%p241_p2), 15360   ;;  %vm401_vm3 = vcmask (!%p241_p2), 1043456   ;;  %vm368_vm4 = vcmask (!%p241_p2), 1031168   ;;  %v1141_v31 = vld [vmem:[%s1644_s1 + $0x4] ss:$8 sm:$0x3] (!%p241_p2) }
   0x9   : > { %v306_v4 = vsub.s32 (!%p241_p2), 0, %v1392_v3  ;;  %v310_v6 = vsub.s32 (!%p241_p2), 1, %v1392_v3  ;;  %s1329_s19 = smov (!%p241_p2), 32   ;;  %s1330_s20 = smov (!%p241_p2), 16   ;;  %v1333_v56 = vmov (!%p241_p2), 0.0   ;;  %v563_v57 = vld [vmem:[%s1646_s3] sm:$0xff] (!%p241_p2) }
   0xa   : > { %s1331_s21 = smov (!%p241_p2), 112   ;;  %s1332_s22 = smov (!%p241_p2), 96   ;;  %777 = vmatprep.mubr.f32.mxu0 (!%p241_p2), %v1333_v56  ;;  %977 = vmatprep.mubr.f32.mxu1 (!%p241_p2), %v1333_v56  ;;  %v564_v58 = vld [vmem:[%s1646_s3 + $0x8] sm:$0xff] (!%p241_p2)  ;;  %v1334_v59 = vmov (!%p241_p2), 0   ;;  %v565_v60 = vld [vmem:[%s1646_s3 + $0x10] sm:$0xff] (!%p241_p2)  ;;  %v567_v61 = vld [vmem:[%s1646_s3 + $0x20] sm:$0xff] (!%p241_p2) }
   0xb   : > { %v331_v10 = vrot.slane (!%p241_p2), %v1139_v5, %v306_v4  ;;  %v355_v13 = vrot.slane (!%p241_p2), %v1140_v7, %v306_v4  ;;  %v359_v14 = vrot.slane (!%p241_p2), %v1140_v7, %v310_v6  ;;  %v335_v15 = vrot.slane (!%p241_p2), %v1139_v5, %v310_v6  ;;  %1306 = vset.pattern.permute.xlu1 (!%p241_p2), %v1334_v59  ;;  %v566_v62 = vld [vmem:[%s1646_s3 + $0x18] sm:$0xff] (!%p241_p2)  ;;  %v569_v63 = vld [vmem:[%s1646_s3 + $0x30] sm:$0xff] (!%p241_p2)  ;;  %v575_v7 = vld [vmem:[%s1646_s3 + $0x60] sm:$0xff] (!%p241_p2) }
   0xc   : > { %v307_v18 = vrot.slane (!%p241_p2), %v302_v11, %v306_v4  ;;  %v311_v26 = vrot.slane (!%p241_p2), %v302_v11, %v310_v6  ;;  %v383_v40 = vrot.slane (!%p241_p2), %v1141_v31, %v310_v6  ;;  %v379_v41 = vrot.slane (!%p241_p2), %v1141_v31, %v306_v4  ;;  %1307 = vset.pattern.permute.xlu0 (!%p241_p2), %v1334_v59  ;;  %v570_v4 = vld [vmem:[%s1646_s3 + $0x38] sm:$0xff] (!%p241_p2)  ;;  %v573_v5 = vld [vmem:[%s1646_s3 + $0x50] sm:$0xff] (!%p241_p2)  ;;  %v572_v6 = vld [vmem:[%s1646_s3 + $0x48] sm:$0xff] (!%p241_p2) }
   0xd   : > { %s1654_s25 = smov (!%p276_p3, %s1129_s25), 1  ;;  %v907_v11 = vld [vmem:[%s1648_s5] sm:$0x7]  ;;  %vm424_vm5 = vcmask 261120   ;;  %vm449_vm7 = vcmask 130048   ;;  %vm471_vm9 = vcmask 916480  }
   0xe   : > { %s1171_s26 = sshll.u32 %s1654_s25, 3  ;;  %vm1495_vm6 = vmneg %vm424_vm5  ;;  %vm493_vm10 = vcmask 785408   ;;  %vm659_vm12 = vcmask 818176   ;;  %vm1030_vm13 = vcmask 1040384   ;;  %vm1031_vm14 = vcmask 1042434   ;;  %s1136_s11 = sshll.u32 %s1654_s25, 1 }
   0xf   : > { %s280_s29 = scalar_lea.vmem %s1643_s0, %s1171_s26  ;;  %vm1176_vm8 = vmpackc.low %vm1495_vm6, %vm1495_vm6  ;;  %s284_s14 = scalar_lea.vmem %s1649_s6, %s1136_s11 }
  0x10   : > { %v290_v0 = vld [vmem:[%s280_s29] sm:$0xff]  ;;  %vm1195_vm11 = vmpackc.low %vm493_vm10, %vm493_vm10 }
  0x11   : > { %340 = vrot.lane.b32.xlu1 %v290_v0, %s1325_s30  ;;  %316 = vrot.lane.b32.xlu0 %v290_v0, %s1326_s8  ;;  %v292_v1 = vcombine.high %v290_v0, %v290_v0  ;;  %vm1032_vm15 = vmor %vm1030_vm13, %vm1031_vm14 }
  0x15   : > { %342 = vrot.lane.b32.xlu1 %v292_v1, %s1325_s30  ;;  %318 = vrot.lane.b32.xlu0 %v292_v1, %s1326_s8  ;;  %s1172_s30 = sshll.u32 %s1654_s25, 2 }
  0x19   : > { %295 = vrot.lane.b32.xlu1 %v292_v1, %s1327_s9  ;;  %293 = vrot.lane.b32.xlu0 %v290_v0, %s1327_s9 }
  0x1d   : > { %366 = vrot.lane.b32.xlu1 %v292_v1, %s1328_s10  ;;  %364 = vrot.lane.b32.xlu0 %v290_v0, %s1328_s10  ;;  %s289_s10 = scalar_lea.vmem %s1650_s7, %s1172_s30 }
  0x83   : > { %v341_v8 = vpop.permute.xlu1 %340  ;;  %v317_v9 = vpop.permute.xlu0 %316 }
  0x84   : > { %v324_v12 = vsel %vm320_vm0, 0.0, %v317_v9 }
  0x85   : > { %v338_v19 = vmul.f32 %v331_v10, %v324_v12  ;;  %v576_v10 = vld [vmem:[%s1646_s3 + $0x68] sm:$0xff] }
  0x87   : > { %v343_v16 = vpop.permute.xlu1 %342  ;;  %v319_v17 = vpop.permute.xlu0 %318  ;;  %v390_v32 = vrot.slane %v338_v19, 4  ;;  %v578_v19 = vld [vmem:[%s1646_s3 + $0x78] sm:$0xff] }
  0x88   : > { %v345_v20 = vsel %vm344_vm1, %v341_v8, %v343_v16  ;;  %v348_v21 = vsel %vm344_vm1, %v343_v16, 0.0  ;;  %v321_v22 = vsel %vm320_vm0, %v317_v9, %v319_v17  ;;  %v574_v8 = vld [vmem:[%s1646_s3 + $0x58] sm:$0xff]  ;;  %v577_v9 = vld [vmem:[%s1646_s3 + $0x70] sm:$0xff]  ;;  %vm1033_vm0 = vcmask 1044484  }
  0x89   : > { %v362_v23 = vmul.f32 %v355_v13, %v345_v20  ;;  %v363_v24 = vmul.f32 %v359_v14, %v348_v21  ;;  %v339_v25 = vmul.f32 %v335_v15, %v321_v22  ;;  %vm1034_vm1 = vmor %vm1032_vm15, %vm1033_vm0 }
  0x8b   : > { %v397_v27 = vrot.slane %v362_v23, 4  ;;  %v398_v28 = vrot.slane %v363_v24, 4  ;;  %v296_v29 = vpop.permute.xlu1 %295  ;;  %v294_v30 = vpop.permute.xlu0 %293  ;;  %v391_v33 = vrot.slane %v339_v25, 4 }
  0x8c   : > { %v298_v34 = vsel %vm297_vm2, %v294_v30, %v296_v29  ;;  %v301_v35 = vsel %vm297_vm2, 0.0, %v294_v30  ;;  %vm1035_vm2 = vcmask 1046534  }
  0x8d   : > { %v1413_v36 = vsel %vm401_vm3, %v290_v0, %v397_v27  ;;  %v1416_v37 = vsel %vm401_vm3, %v292_v1, %v398_v28  ;;  %v314_v38 = vmul.f32 %v307_v18, %v301_v35  ;;  %v315_v39 = vmul.f32 %v311_v26, %v298_v34  ;;  %v568_v0 = vld [vmem:[%s1646_s3 + $0x28] sm:$0xff]  ;;  %v571_v1 = vld [vmem:[%s1646_s3 + $0x40] sm:$0xff] }
  0x8e   : > { %v1256_v42 = vpack.i.bf16 %v1416_v37, %v1413_v36 }
  0x8f   : > { %v1421_v43 = vsel %vm401_vm3, %v314_v38, %v390_v32  ;;  %v1424_v44 = vsel %vm401_vm3, %v315_v39, %v391_v33  ;;  %v367_v45 = vpop.permute.xlu1 %366  ;;  %v365_v46 = vpop.permute.xlu0 %364 }
  0x90   : > { %v372_v47 = vsel %vm368_vm4, %v367_v45, 0.0  ;;  %v369_v48 = vsel %vm368_vm4, %v365_v46, %v367_v45  ;;  %1257 = vrot.lane.b32.xlu1 %v1256_v42, %s1329_s19  ;;  %v1251_v49 = vpack.i.bf16 %v1424_v44, %v1421_v43  ;;  %v1281_v54 = vpack.i.bf16 %v1421_v43, %v1424_v44 }
  0x91   : > { %v1430_v50 = vmul.f32 %v383_v40, %v372_v47  ;;  %v1432_v51 = vmul.f32 %v379_v41, %v369_v48  ;;  %vm1016_vm4 = vcmp.lt.s32.totalorder %v304_v2, 256 }
  0x92   : > { %1252 = vrot.lane.b32.xlu0 %v1251_v49, %s1329_s19 }
  0x93   : > { %v1276_v52 = vpack.i.bf16 %v1430_v50, %v1432_v51  ;;  %v1286_v53 = vpack.i.bf16 %v1430_v50, %v1416_v37  ;;  %v1291_v55 = vpack.i.bf16 %v1432_v51, %v1413_v36 }
  0x94   : > { %1272 = vrot.lane.b32.xlu1 %v1256_v42, %s1330_s20 }
  0x96   : > { %1262 = vrot.lane.b32.xlu0 %v1251_v49, %s1330_s20 }
  0x98   : > { %1277 = vrot.lane.b32.xlu1 %v1276_v52, %s1330_s20 }
  0x9a   : > { %1267 = vrot.lane.b32.xlu0 %v1276_v52, %s1329_s19 }
  0x9c   : > { %1287 = vrot.lane.b32.xlu1 %v1286_v53, %s1331_s21 }
  0x9e   : > { %1282 = vrot.lane.b32.xlu0 %v1281_v54, %s1331_s21 }
  0xa0   : > { %1297 = vrot.lane.b32.xlu1 %v1251_v49, %s1332_s22 }
  0xa2   : > { %1292 = vrot.lane.b32.xlu0 %v1291_v55, %s1331_s21 }
  0xa4   : > { %491 = vrot.lane.b32.xlu1 %v1430_v50, %s1332_s22 }
  0xa6   : > { %1302 = vrot.lane.b32.xlu0 %v1256_v42, %s1332_s22 }
  0xa8   : > { %581 = vperm.xlu1 %1306, %v563_v57  }
  0xaa   : > { %489 = vrot.lane.b32.xlu0 %v1432_v51, %s1332_s22 }
  0xac   : > { %591 = vperm.xlu1 %1306, %v565_v60  }
  0xae   : > { %586 = vperm.xlu0 %1307, %v564_v58  }
  0xb0   : > { %596 = vperm.xlu1 %1306, %v566_v62  }
  0xb2   : > { %601 = vperm.xlu0 %1307, %v567_v61  }
  0xb4   : > { %606 = vperm.xlu1 %1306, %v568_v0  }
  0xb6   : > { %611 = vperm.xlu0 %1307, %v569_v63  }
  0xb8   : > { %616 = vperm.xlu1 %1306, %v570_v4  }
  0xba   : > { %621 = vperm.xlu0 %1307, %v571_v1  }
  0xbc   : > { %626 = vperm.xlu1 %1306, %v572_v6  }
  0xbe   : > { %631 = vperm.xlu0 %1307, %v573_v5  }
  0xc0   : > { %636 = vperm.xlu1 %1306, %v574_v8  }
  0xc2   : > { %641 = vperm.xlu0 %1307, %v575_v7  }
  0xc4   : > { %646 = vperm.xlu1 %1306, %v576_v10  }
  0xc6   : > { %651 = vperm.xlu0 %1307, %v577_v9  }
  0xc8   : > { %656 = vperm.xlu1 %1306, %v578_v19  }
  0xca   : > { %910 = vperm.xlu0 %1307, %v907_v11  }
 0x102   : > { %v1258_v12 = vpop.permute.xlu1 %1257 }
 0x103   : > { %v1260_v13 = vunpack.i.h.bf16 %v1258_v12  ;;  %v1259_v14 = vunpack.i.l.bf16 %v1258_v12 }
 0x104   : > { %v1253_v15 = vpop.permute.xlu0 %1252 }
 0x105   : > { %v1255_v16 = vunpack.i.h.bf16 %v1253_v15  ;;  %v1254_v17 = vunpack.i.l.bf16 %v1253_v15  ;;  %v426_v24 = vsel %vm424_vm5, %v1259_v14, %v1260_v13 }
 0x106   : > { %v1273_v20 = vpop.permute.xlu1 %1272 }
 0x107   : > { %v1275_v21 = vunpack.i.h.bf16 %v1273_v20  ;;  %v1274_v22 = vunpack.i.l.bf16 %v1273_v20  ;;  %v425_v23 = vsel %vm424_vm5, %v1254_v17, %v1255_v16  ;;  %v1175_v27 = vpack.c.bf16 %v1259_v14, %v1254_v17 }
 0x108   : > { %v1263_v25 = vpop.permute.xlu0 %1262  ;;  %v1173_v26 = vpack.c.bf16 %v426_v24, %v425_v23 }
 0x109   : > { %v1265_v28 = vunpack.i.h.bf16 %v1263_v25  ;;  %v1264_v29 = vunpack.i.l.bf16 %v1263_v25  ;;  %v451_v30 = vsel %vm449_vm7, %v1274_v22, %v1275_v21  ;;  %v457_v31 = vsel %vm449_vm7, 0.0, %v1274_v22 }
 0x10a   : > { %v1278_v32 = vpop.permute.xlu1 %1277  ;;  %1174 = vmatprep.subr.bf16.mxu0 %v1173_v26  ;;  %v510_v48 = vrot.slane %v457_v31, 4  ;;  %v512_v49 = vrot.slane %v451_v30, 4 }
 0x10b   : > { %v450_v33 = vsel %vm449_vm7, %v1264_v29, %v1265_v28  ;;  %v456_v34 = vsel %vm449_vm7, 0.0, %v1264_v29  ;;  %v1280_v35 = vunpack.i.h.bf16 %v1278_v32  ;;  %v1279_v38 = vunpack.i.l.bf16 %v1278_v32  ;;  %1177 = vmatpush1.bf16.msk.msra.mxu0 %vm1176_vm8, %v1175_v27 }
 0x10c   : > { %v508_v39 = vrot.slane %v456_v34, 4  ;;  %v509_v40 = vrot.slane %v450_v33, 4  ;;  %v1268_v41 = vpop.permute.xlu0 %1267 }
 0x10d   : > { %v452_v42 = vsel %vm449_vm7, %v1279_v38, %v1280_v35  ;;  %v458_v45 = vsel %vm449_vm7, 0.0, %v1279_v38  ;;  %v1270_v46 = vunpack.i.h.bf16 %v1268_v41  ;;  %v1269_v47 = vunpack.i.l.bf16 %v1268_v41 }
 0x10e   : > { %v516_v52 = vrot.slane %v452_v42, 4  ;;  %v1288_v53 = vpop.permute.xlu1 %1287  ;;  %v514_v59 = vrot.slane %v458_v45, 4  ;;  %v513_v61 = vsel %vm401_vm3, %v509_v40, %v512_v49  ;;  %v511_v4 = vsel %vm401_vm3, %v508_v39, %v510_v48 }
 0x10f   : > { %v427_v54 = vsel %vm424_vm5, %v1269_v47, %v1270_v46  ;;  %v436_v55 = vsel %vm424_vm5, 0.0, %v1269_v47  ;;  %v1290_v57 = vunpack.i.h.bf16 %v1288_v53  ;;  %v1289_v58 = vunpack.i.l.bf16 %v1288_v53  ;;  %v547_v47 = vld [vmem:[%s1645_s2] sm:$0xff]  ;;  %v550_v53 = vld [vmem:[%s1645_s2 + $0x18] sm:$0xff] }
 0x110   : > { %v1283_v60 = vpop.permute.xlu0 %1282  ;;  %v544_v62 = vsel %vm401_vm3, %v427_v54, %v509_v40  ;;  %v543_v63 = vsel %vm401_vm3, %v436_v55, %v508_v39  ;;  %v517_v5 = vsel %vm401_vm3, %v512_v49, %v516_v52  ;;  %v515_v16 = vsel %vm401_vm3, %v510_v48, %v514_v59  ;;  %v548_v49 = vld [vmem:[%s1645_s2 + $0x8] sm:$0xff]  ;;  %v549_v52 = vld [vmem:[%s1645_s2 + $0x10] sm:$0xff]  ;;  %v551_v54 = vld [vmem:[%s1645_s2 + $0x20] sm:$0xff] }
 0x111   : > { %v1285_v0 = vunpack.i.h.bf16 %v1283_v60  ;;  %v1284_v1 = vunpack.i.l.bf16 %v1283_v60  ;;  %v1178_v6 = vpack.c.bf16 %v513_v61, %v544_v62  ;;  %v1180_v7 = vpack.c.bf16 %v511_v4, %v543_v63  ;;  %v552_v55 = vld [vmem:[%s1645_s2 + $0x28] sm:$0xff]  ;;  %v555_v59 = vld [vmem:[%s1645_s2 + $0x40] sm:$0xff]  ;;  %v557_v61 = vld [vmem:[%s1645_s2 + $0x50] sm:$0xff] }
 0x112   : > { %v480_v8 = vsel %vm471_vm9, %v1290_v57, 0.0  ;;  %v479_v9 = vsel %vm471_vm9, %v1289_v58, 0.0  ;;  %v1182_v15 = vpack.c.bf16 %v1424_v44, %v517_v5  ;;  %v1184_v24 = vpack.c.bf16 %v1421_v43, %v515_v16  ;;  %v1298_v30 = vpop.permute.xlu1 %1297  ;;  %v556_v60 = vld [vmem:[%s1645_s2 + $0x48] sm:$0xff]  ;;  %v558_v62 = vld [vmem:[%s1645_s2 + $0x58] sm:$0xff]  ;;  %v559_v63 = vld [vmem:[%s1645_s2 + $0x60] sm:$0xff] }
 0x113   : > { %v472_v10 = vsel %vm471_vm9, %v1285_v0, %v1284_v1  ;;  %v478_v11 = vsel %vm471_vm9, %v1284_v1, 0.0  ;;  %1179 = vmatprep.subr.bf16.mxu0 %v1178_v6  ;;  %v535_v19 = vrot.slane %v480_v8, 4  ;;  %v531_v20 = vrot.slane %v479_v9, 4  ;;  %v560_v0 = vld [vmem:[%s1645_s2 + $0x68] sm:$0xff]  ;;  %v561_v1 = vld [vmem:[%s1645_s2 + $0x70] sm:$0xff]  ;;  %v562_v4 = vld [vmem:[%s1645_s2 + $0x78] sm:$0xff] }
 0x114   : > { %v527_v12 = vrot.slane %v472_v10, 4  ;;  %v528_v13 = vrot.slane %v478_v11, 4  ;;  %v1293_v14 = vpop.permute.xlu0 %1292  ;;  %1181 = vmatpush1.bf16.msra.mxu0 %v1180_v7  ;;  %v1300_v35 = vunpack.i.h.bf16 %v1298_v30 }
 0x115   : > { %v1295_v17 = vunpack.i.h.bf16 %v1293_v14  ;;  %v1294_v18 = vunpack.i.l.bf16 %v1293_v14  ;;  %1183 = vmatprep.subr.bf16.mxu0 %v1182_v15 }
 0x116   : > { %v546_v21 = vsel %vm401_vm3, %v1430_v50, %v528_v13  ;;  %v545_v27 = vsel %vm401_vm3, %v1432_v51, %v527_v12  ;;  %v532_v28 = vsel %vm401_vm3, %v528_v13, %v531_v20  ;;  %v536_v50 = vsel %vm401_vm3, %v531_v20, %v535_v19 }
 0x117   : > { %v474_v22 = vsel %vm471_vm9, %v1295_v17, %v1290_v57  ;;  %v473_v23 = vsel %vm471_vm9, %v1294_v18, %v1289_v58  ;;  %v1186_v25 = vpack.c.bf16 %v546_v21, %v1416_v37  ;;  %v1188_v31 = vpack.c.bf16 %v545_v27, %v1413_v36  ;;  %v492_v36 = vpop.permute.xlu1 %491  ;;  %v553_v57 = vld [vmem:[%s1645_s2 + $0x30] sm:$0xff]  ;;  %v554_v58 = vld [vmem:[%s1645_s2 + $0x38] sm:$0xff] }
 0x118   : > { %v533_v44 = vrot.slane %v474_v22, 4  ;;  %v529_v26 = vrot.slane %v473_v23, 4  ;;  %v1303_v29 = vpop.permute.xlu0 %1302  ;;  %1185 = vmatpush1.bf16.msra.mxu0 %v1184_v24  ;;  %v1190_v32 = vpack.c.bf16 %v536_v50, %v532_v28  ;;  %v1299_v51 = vunpack.i.l.bf16 %v1298_v30 }
 0x119   : > { %1187 = vmatprep.subr.bf16.mxu0 %v1186_v25  ;;  %v1305_v33 = vunpack.i.h.bf16 %v1303_v29  ;;  %v1304_v43 = vunpack.i.l.bf16 %v1303_v29  ;;  %v504_v45 = vsel %vm493_vm10, %v492_v36, 0.0 }
 0x11a   : > { %v530_v37 = vsel %vm401_vm3, %v527_v12, %v529_v26  ;;  %v534_v34 = vsel %vm401_vm3, %v529_v26, %v533_v44  ;;  %v494_v41 = vsel %vm493_vm10, %v1299_v51, %v1300_v35 }
 0x11b   : > { %v1192_v38 = vpack.c.bf16 %v534_v34, %v530_v37  ;;  %v1194_v39 = vpack.c.bf16 %v1305_v33, %v1300_v35  ;;  %v495_v40 = vsel %vm493_vm10, %v1304_v43, %v1305_v33 }
 0x11c   : > { %1189 = vmatpush1.bf16.msra.mxu0 %v1188_v31  ;;  %v1197_v42 = vpack.c.bf16 %v495_v40, %v494_v41  ;;  %v490_v46 = vpop.permute.xlu0 %489 }
 0x11d   : > { %1191 = vmatprep.subr.bf16.mxu0 %v1190_v32  ;;  %v496_v48 = vsel %vm493_vm10, %v490_v46, %v492_v36 }
 0x120   : > { %1193 = vmatpush1.bf16.msra.mxu0 %v1192_v38 }
 0x121   : > { %1196 = vmatprep.subr.msk.bf16.mxu0 %vm1195_vm11, %v1194_v39 }
 0x124   : > { %1198 = vmatpush1.bf16.msra.mxu0 %v1197_v42 }
 0x125   : > { %1148 = vmatprep.subr.msk.mxu0 %vm401_vm3, %v504_v45 }
 0x127   : > { %v582_v5 = vpop.permute.xlu1 %581 }
 0x128   : > { %1149 = vmatpush1.msk.msra.mxu0 %vm401_vm3, %v496_v48  ;;  %vm1036_vm3 = vmor %vm1034_vm1, %vm1035_vm2 }
 0x129   : > { %1150 = vmatmul.mubr.msk.f32.vlgmr.msra.gmra.mrb[0].mxu0 %vm659_vm12, %v547_v47 }
 0x12a   : > { %783 = vmatprep.mubr.f32.mxu0 %v1333_v56 }
 0x12b   : > { %v592_v14 = vpop.permute.xlu1 %591 }
 0x12d   : > { %1151 = vmatmul.mubr.msk.f32.gmra.mrb[2].mxu0 %vm659_vm12, %v548_v49  ;;  %v587_v8 = vpop.permute.xlu0 %586 }
 0x12e   : > { %789 = vmatprep.mubr.f32.mxu0 %v1333_v56 }
 0x12f   : > { %v597_v24 = vpop.permute.xlu1 %596 }
 0x131   : > { %1152 = vmatmul.mubr.msk.f32.gmra.mrb[4].mxu0 %vm659_vm12, %v549_v52  ;;  %v602_v37 = vpop.permute.xlu0 %601 }
 0x132   : > { %795 = vmatprep.mubr.f32.mxu0 %v1333_v56 }
 0x133   : > { %v607_v51 = vpop.permute.xlu1 %606 }
 0x135   : > { %1153 = vmatmul.mubr.msk.f32.gmra.mrb[6].mxu0 %vm659_vm12, %v550_v53  ;;  %v612_v53 = vpop.permute.xlu0 %611 }
 0x136   : > { %801 = vmatprep.mubr.f32.mxu0 %v1333_v56 }
 0x139   : > { %1154 = vmatmul.mubr.msk.f32.gmra.mrb[8].mxu0 %vm659_vm12, %v551_v54 }
 0x13a   : > { %807 = vmatprep.mubr.f32.mxu0 %v1333_v56 }
 0x13d   : > { %1155 = vmatmul.mubr.msk.f32.gmra.mrb[10].mxu0 %vm659_vm12, %v552_v55 }
 0x13e   : > { %813 = vmatprep.mubr.f32.mxu0 %v1333_v56 }
 0x141   : > { %1156 = vmatmul.mubr.msk.f32.gmra.mrb[12].mxu0 %vm659_vm12, %v553_v57  ;;  %v617_v57 = vpop.permute.xlu1 %616 }
 0x142   : > { %819 = vmatprep.mubr.f32.mxu0 %v1333_v56 }
 0x145   : > { %1157 = vmatmul.mubr.msk.f32.gmra.mrb[14].mxu0 %vm659_vm12, %v554_v58 }
 0x146   : > { %825 = vmatprep.mubr.f32.mxu0 %v1333_v56 }
 0x149   : > { %1158 = vmatmul.mubr.msk.f32.gmra.mrb[16].mxu0 %vm659_vm12, %v555_v59 }
 0x14a   : > { %831 = vmatprep.mubr.f32.mxu0 %v1333_v56 }
 0x14d   : > { %1159 = vmatmul.mubr.msk.f32.gmra.mrb[18].mxu0 %vm659_vm12, %v556_v60 }
 0x14e   : > { %837 = vmatprep.mubr.f32.mxu0 %v1333_v56 }
 0x151   : > { %1160 = vmatmul.mubr.msk.f32.gmra.mrb[20].mxu0 %vm659_vm12, %v557_v61 }
 0x152   : > { %843 = vmatprep.mubr.f32.mxu0 %v1333_v56 }
 0x155   : > { %1161 = vmatmul.mubr.msk.f32.gmra.mrb[22].mxu0 %vm659_vm12, %v558_v62 }
 0x156   : > { %849 = vmatprep.mubr.f32.mxu0 %v1333_v56 }
 0x159   : > { %1162 = vmatmul.mubr.msk.f32.gmra.mrb[24].mxu0 %vm659_vm12, %v559_v63 }
 0x15a   : > { %855 = vmatprep.mubr.f32.mxu0 %v1333_v56 }
 0x15d   : > { %1163 = vmatmul.mubr.msk.f32.gmra.mrb[26].mxu0 %vm659_vm12, %v560_v0 }
 0x15e   : > { %861 = vmatprep.mubr.f32.mxu0 %v1333_v56 }
 0x161   : > { %1164 = vmatmul.mubr.msk.f32.gmra.mrb[28].mxu0 %vm659_vm12, %v561_v1 }
 0x162   : > { %867 = vmatprep.mubr.f32.mxu0 %v1333_v56 }
 0x165   : > { %1165 = vmatmul.mubr.msk.f32.gmra.mrb[30].mxu0 %vm659_vm12, %v562_v4 }
 0x1fc   : > { %v779_v6 = vpop.f32.mrb[0].mxu0 }
 0x1fd   : > { %v781_v7 = vpop.f32.mrb[1].mxu0  ;;  %v780_v9 = vadd.f32 %v779_v6, %v582_v5 }
 0x1fe   : > { %v782_v10 = vadd.f32 %v781_v7, %v582_v5 }
 0x1ff   : > { %v874_v16 = vmax.f32 %v780_v9, 0.0 }
 0x200   : > { %v785_v11 = vpop.f32.mrb[2].mxu0  ;;  %v875_v56 = vmax.f32 %v782_v10, 0.0 }
 0x201   : > { %v786_v12 = vadd.f32 %v785_v11, %v587_v8  ;;  %v787_v13 = vpop.f32.mrb[3].mxu0  ;;  %v627_v11 = vpop.permute.xlu1 %626 }
 0x202   : > { %v788_v15 = vadd.f32 %v787_v13, %v587_v8  ;;  %v622_v8 = vpop.permute.xlu0 %621 }
 0x203   : > { %v876_v17 = vmax.f32 %v786_v12, 0.0 }
 0x204   : > { %v877_v18 = vmax.f32 %v788_v15, 0.0  ;;  %v791_v19 = vpop.f32.mrb[4].mxu0 }
 0x205   : > { %v793_v20 = vpop.f32.mrb[5].mxu0  ;;  %v1201_v21 = vpack.c.bf16 %v876_v17, %v874_v16  ;;  %v792_v23 = vadd.f32 %v791_v19, %v592_v14 }
 0x206   : > { %v1199_v22 = vpack.c.bf16 %v877_v18, %v875_v56  ;;  %v794_v25 = vadd.f32 %v793_v20, %v592_v14 }
 0x207   : > { %v878_v29 = vmax.f32 %v792_v23, 0.0  ;;  %v632_v23 = vpop.permute.xlu0 %631 }
 0x208   : > { %v797_v44 = vpop.f32.mrb[6].mxu0  ;;  %1200 = vmatprep.subr.bf16.mxu1 %v1199_v22  ;;  %v879_v30 = vmax.f32 %v794_v25, 0.0 }
 0x209   : > { %v798_v26 = vadd.f32 %v797_v44, %v597_v24  ;;  %v799_v27 = vpop.f32.mrb[7].mxu0  ;;  %1202 = vmatpush1.bf16.msra.mxu1 %v1201_v21  ;;  %v637_v44 = vpop.permute.xlu1 %636 }
 0x20a   : > { %v800_v28 = vadd.f32 %v799_v27, %v597_v24 }
 0x20b   : > { %v880_v50 = vmax.f32 %v798_v26, 0.0 }
 0x20c   : > { %v881_v31 = vmax.f32 %v800_v28, 0.0  ;;  %v803_v32 = vpop.f32.mrb[8].mxu0 }
 0x20d   : > { %v1205_v33 = vpack.c.bf16 %v880_v50, %v878_v29  ;;  %v805_v43 = vpop.f32.mrb[9].mxu0  ;;  %v804_v35 = vadd.f32 %v803_v32, %v602_v37 }
 0x20e   : > { %v1203_v34 = vpack.c.bf16 %v881_v31, %v879_v30  ;;  %v806_v38 = vadd.f32 %v805_v43, %v602_v37 }
 0x20f   : > { %v882_v42 = vmax.f32 %v804_v35, 0.0  ;;  %v642_v35 = vpop.permute.xlu0 %641 }
 0x210   : > { %v809_v39 = vpop.f32.mrb[10].mxu0  ;;  %1204 = vmatprep.subr.bf16.mxu1 %v1203_v34  ;;  %v883_v46 = vmax.f32 %v806_v38, 0.0 }
 0x211   : > { %v810_v40 = vadd.f32 %v809_v39, %v607_v51  ;;  %v811_v36 = vpop.f32.mrb[11].mxu0  ;;  %1206 = vmatpush1.bf16.msra.mxu1 %v1205_v33  ;;  %v647_v39 = vpop.permute.xlu1 %646 }
 0x212   : > { %v812_v41 = vadd.f32 %v811_v36, %v607_v51 }
 0x213   : > { %v884_v45 = vmax.f32 %v810_v40, 0.0 }
 0x214   : > { %v885_v47 = vmax.f32 %v812_v41, 0.0  ;;  %v815_v48 = vpop.f32.mrb[12].mxu0 }
 0x215   : > { %v1209_v49 = vpack.c.bf16 %v884_v45, %v882_v42  ;;  %v817_v52 = vpop.f32.mrb[13].mxu0  ;;  %v816_v55 = vadd.f32 %v815_v48, %v612_v53 }
 0x216   : > { %v1207_v54 = vpack.c.bf16 %v885_v47, %v883_v46  ;;  %v818_v58 = vadd.f32 %v817_v52, %v612_v53 }
 0x217   : > { %v886_v63 = vmax.f32 %v816_v55, 0.0  ;;  %v652_v55 = vpop.permute.xlu0 %651 }
 0x218   : > { %v821_v59 = vpop.f32.mrb[14].mxu0  ;;  %1208 = vmatprep.subr.bf16.mxu1 %v1207_v54  ;;  %v887_v1 = vmax.f32 %v818_v58, 0.0 }
 0x219   : > { %v822_v60 = vadd.f32 %v821_v59, %v617_v57  ;;  %v823_v61 = vpop.f32.mrb[15].mxu0  ;;  %1210 = vmatpush1.bf16.msra.mxu1 %v1209_v49  ;;  %v657_v59 = vpop.permute.xlu1 %656 }
 0x21a   : > { %v824_v62 = vadd.f32 %v823_v61, %v617_v57 }
 0x21b   : > { %v888_v0 = vmax.f32 %v822_v60, 0.0 }
 0x21c   : > { %v889_v4 = vmax.f32 %v824_v62, 0.0  ;;  %v827_v5 = vpop.f32.mrb[16].mxu0 }
 0x21d   : > { %v1213_v6 = vpack.c.bf16 %v888_v0, %v886_v63  ;;  %v829_v7 = vpop.f32.mrb[17].mxu0  ;;  %v828_v10 = vadd.f32 %v827_v5, %v622_v8 }
 0x21e   : > { %v1211_v9 = vpack.c.bf16 %v889_v4, %v887_v1  ;;  %v830_v12 = vadd.f32 %v829_v7, %v622_v8 }
 0x21f   : > { %v890_v17 = vmax.f32 %v828_v10, 0.0  ;;  %v1335_v10 = vmov 1983009808  }
 0x220   : > { %v833_v13 = vpop.f32.mrb[18].mxu0  ;;  %1212 = vmatprep.subr.bf16.mxu1 %v1211_v9  ;;  %v891_v18 = vmax.f32 %v830_v12, 0.0  ;;  %v906_v9 = vld [vmem:[%s1647_s4] sm:$0x7] }
 0x221   : > { %v834_v14 = vadd.f32 %v833_v13, %v627_v11  ;;  %v835_v15 = vpop.f32.mrb[19].mxu0  ;;  %1214 = vmatpush1.bf16.msra.mxu1 %v1213_v6  ;;  %v911_v13 = vpop.permute.xlu0 %910 }
 0x222   : > { %v836_v16 = vadd.f32 %v835_v15, %v627_v11  ;;  %v1023_v11 = vunpack.c.l.s4 %v1335_v10 }
 0x223   : > { %v892_v56 = vmax.f32 %v834_v14, 0.0 }
 0x224   : > { %v893_v19 = vmax.f32 %v836_v16, 0.0  ;;  %v839_v20 = vpop.f32.mrb[20].mxu0  ;;  %v1024_v12 = vunpack.c.0.s8 %v1023_v11 }
 0x225   : > { %v1217_v21 = vpack.c.bf16 %v892_v56, %v890_v17  ;;  %v841_v22 = vpop.f32.mrb[21].mxu0  ;;  %v840_v25 = vadd.f32 %v839_v20, %v632_v23 }
 0x226   : > { %v1215_v24 = vpack.c.bf16 %v893_v19, %v891_v18  ;;  %v842_v26 = vadd.f32 %v841_v22, %v632_v23  ;;  %v1027_v56 = vsub.s32 %v1024_v12, %v1392_v3 }
 0x227   : > { %v894_v30 = vmax.f32 %v840_v25, 0.0 }
 0x228   : > { %v845_v27 = vpop.f32.mrb[22].mxu0  ;;  %1216 = vmatprep.subr.bf16.mxu1 %v1215_v24  ;;  %v895_v32 = vmax.f32 %v842_v26, 0.0 }
 0x229   : > { %v846_v28 = vadd.f32 %v845_v27, %v637_v44  ;;  %v847_v29 = vpop.f32.mrb[23].mxu0  ;;  %1218 = vmatpush1.bf16.msra.mxu1 %v1217_v21 }
 0x22a   : > { %v848_v50 = vadd.f32 %v847_v29, %v637_v44  ;;  %v1336_v29 = vmov 1966171168  }
 0x22b   : > { %v896_v31 = vmax.f32 %v846_v28, 0.0 }
 0x22c   : > { %v897_v33 = vmax.f32 %v848_v50, 0.0  ;;  %v851_v43 = vpop.f32.mrb[24].mxu0  ;;  %v1000_v50 = vunpack.c.l.s4 %v1336_v29 }
 0x22d   : > { %v1221_v37 = vpack.c.bf16 %v896_v31, %v894_v30  ;;  %v853_v34 = vpop.f32.mrb[25].mxu0  ;;  %v852_v38 = vadd.f32 %v851_v43, %v642_v35 }
 0x22e   : > { %v1219_v51 = vpack.c.bf16 %v897_v33, %v895_v32  ;;  %v854_v40 = vadd.f32 %v853_v34, %v642_v35  ;;  %v1001_v30 = vunpack.c.0.s8 %v1000_v50 }
 0x22f   : > { %v898_v46 = vmax.f32 %v852_v38, 0.0 }
 0x230   : > { %v857_v36 = vpop.f32.mrb[26].mxu0  ;;  %1220 = vmatprep.subr.bf16.mxu1 %v1219_v51  ;;  %v899_v48 = vmax.f32 %v854_v40, 0.0  ;;  %v1004_v32 = vsub.s32 %v1001_v30, %v1392_v3 }
 0x231   : > { %v858_v41 = vadd.f32 %v857_v36, %v647_v39  ;;  %v859_v42 = vpop.f32.mrb[27].mxu0  ;;  %1222 = vmatpush1.bf16.msra.mxu1 %v1221_v37 }
 0x232   : > { %v860_v45 = vadd.f32 %v859_v42, %v647_v39 }
 0x233   : > { %v900_v47 = vmax.f32 %v858_v41, 0.0 }
 0x234   : > { %v901_v49 = vmax.f32 %v860_v45, 0.0  ;;  %v863_v52 = vpop.f32.mrb[28].mxu0 }
 0x235   : > { %v1225_v53 = vpack.c.bf16 %v900_v47, %v898_v46  ;;  %v865_v54 = vpop.f32.mrb[29].mxu0  ;;  %v864_v58 = vadd.f32 %v863_v52, %v652_v55 }
 0x236   : > { %v1223_v57 = vpack.c.bf16 %v901_v49, %v899_v48  ;;  %v866_v60 = vadd.f32 %v865_v54, %v652_v55 }
 0x237   : > { %v902_v1 = vmax.f32 %v864_v58, 0.0 }
 0x238   : > { %v869_v61 = vpop.f32.mrb[30].mxu0  ;;  %1224 = vmatprep.subr.bf16.mxu1 %v1223_v57  ;;  %v903_v5 = vmax.f32 %v866_v60, 0.0 }
 0x239   : > { %v870_v62 = vadd.f32 %v869_v61, %v657_v59  ;;  %v871_v63 = vpop.f32.mrb[31].mxu0  ;;  %1226 = vmatpush1.bf16.msra.mxu1 %v1225_v53 }
 0x23a   : > { %v872_v0 = vadd.f32 %v871_v63, %v657_v59 }
 0x23b   : > { %v904_v4 = vmax.f32 %v870_v62, 0.0 }
 0x23c   : > { %v905_v6 = vmax.f32 %v872_v0, 0.0 }
 0x23d   : > { %v1229_v7 = vpack.c.bf16 %v904_v4, %v902_v1 }
 0x23e   : > { %v1227_v8 = vpack.c.bf16 %v905_v6, %v903_v5 }
 0x240   : > { %1228 = vmatprep.subr.bf16.mxu1 %v1227_v8 }
 0x241   : > { %1230 = vmatpush1.bf16.msra.mxu1 %v1229_v7 }
 0x244   : > { %978 = vmatmul.mubr.f32.vlgmr.msra.gmra.mrb[0].mxu1 %v906_v9 }
 0x317   : > { %v979_v14 = vpop.f32.mrb[0].mxu1 }
 0x318   : > { %v980_v15 = vadd.f32 %v979_v14, %v911_v13  ;;  %v981_v16 = vpop.f32.mrb[1].mxu1 }
 0x319   : > { %v982_v17 = vadd.f32 %v981_v16, %v911_v13 }
 0x31a   : > { %v1166_v18 = vmul.f32 -1.442695, %v980_v15 }
 0x31b   : > { %v1167_v19 = vmul.f32 -1.442695, %v982_v17  ;;  %v1021_v20 = vcombine.low %v980_v15, %v982_v17 }
 0x31c   : > { %1309 = vpow2.f32 %v1166_v18 }
 0x31d   : > { %1311 = vpow2.f32 %v1167_v19  ;;  %v1028_v21 = vrot.slane %v1021_v20, %v1027_v56 }
 0x31f   : > { %v1029_v22 = vcombine.high %v1028_v21, %v1028_v21  ;;  %v1168_v23 = vrot.slane %v1028_v21, 9 }
 0x321   : > { %v1039_v24 = vrot.slane %v1029_v22, 7 }
 0x323   : > { %v1040_v25 = vsel %vm1036_vm3, %v1168_v23, %v1039_v24 }
 0x324   : > { %1042 = vst [vmem:[%s289_s10] sm:$0xf] %v1040_v25 }
 0x326   : > { %v1310_v44 = vpop.eup %1309 }
 0x327   : > { %v1312_v26 = vpop.eup %1311  ;;  %v990_v27 = vadd.f32 1.0, %v1310_v44 }
 0x328   : > { %v991_v28 = vadd.f32 1.0, %v1312_v26 }
 0x329   : > { %1313 = vrcp.f32 %v990_v27 }
 0x32a   : > { %1315 = vrcp.f32 %v991_v28 }
 0x333   : > { %v1314_v31 = vpop.eup %1313 }
 0x334   : > { %v1316_v33 = vpop.eup %1315 }
 0x335   : > { %v998_v43 = vcombine.low %v1314_v31, %v1316_v33 }
 0x337   : > { %v1005_v37 = vrot.slane %v998_v43, %v1004_v32 }
 0x339   : > { %v1012_v34 = vrot.slane %v1005_v37, %v1004_v32 }
 0x33b   : > { %1018 = vst.msk [vmem:[%s284_s14] sm:$0x3] %vm1016_vm4, %v1012_v34 }
 0x33c PF: > { %s18_s24 = sadd.s32 1, %s1323_s24  }
 0x33d   : > { %p15_p4 = scmp.ge.s32.totalorder %s18_s24, 4  }
 0x33f   :  { %17 = sbr.rel (!%p15_p4) target bundleno = 1 (0x1), region = 89 }

</bundles_post_ra>
